<compile_context>
chip_gen: v5e
topology: v5e:2x2
jax: 0.10.0
libtpu: 0.0.40
codegen_flags: <defaults>
</compile_context>

<pallas_src>
import math

import jax
import jax.numpy as jnp
from jax.experimental import pallas as pl
from jax.experimental.pallas import tpu as pltpu

BN_EPS = 1e-5
LANE = 128


def _slab_rows(layer_sizes):
    n_layers = len(layer_sizes) - 1
    n_vec = 2 * (n_layers - 1) + 1           # (gamma, beta) per BN layer + final bias
    n_vec_pad = -(-n_vec // 8) * 8           # round up to a full sublane tile
    return n_layers * LANE + n_vec_pad


def _make_fused_kernel(layer_sizes, batch):
    """One kernel body running the whole MLP; intermediates never leave vregs."""
    n_layers = len(layer_sizes) - 1
    inv_b = 1.0 / float(batch)
    vec_base = n_layers * LANE
    bias_row = vec_base + 2 * (n_layers - 1)

    def kernel(x_ref, slab_ref, o_ref):
        h = x_ref[...]                                    # (B, 128) f32, lane-padded with 0
        for li in range(n_layers):
            w = slab_ref[li * LANE:(li + 1) * LANE, :]    # (128, 128) zero-padded block
            y = jnp.dot(h, w, preferred_element_type=jnp.float32)
            if li == n_layers - 1:
                bias = slab_ref[bias_row:bias_row + 1, :]
                h = y + bias                              # padded lanes stay exactly 0
            else:
                gamma = slab_ref[vec_base + 2 * li:vec_base + 2 * li + 1, :]
                beta = slab_ref[vec_base + 2 * li + 1:vec_base + 2 * li + 2, :]
                # Training-mode BatchNorm1d (biased batch variance), two-pass for
                # stability.  The preceding Linear bias cancels exactly under the
                # batch-mean subtraction and is folded away at pack time.
                mean = jnp.sum(y, axis=0, keepdims=True) * inv_b
                yc = y - mean
                var = jnp.sum(yc * yc, axis=0, keepdims=True) * inv_b
                scale = gamma * jax.lax.rsqrt(var + BN_EPS)
                h = jnp.maximum(yc * scale + beta, 0.0)   # padded lanes: gamma=beta=0 -> 0
        o_ref[...] = h

    return kernel


def _cost_estimate(layer_sizes, batch, groups=1):
    n_layers = len(layer_sizes) - 1
    flops = 2 * batch * LANE * LANE * n_layers * groups
    transcendentals = (n_layers - 1) * LANE * groups
    bytes_accessed = 4 * (_slab_rows(layer_sizes) * LANE + 2 * groups * batch * LANE)
    return pl.CostEstimate(flops=flops, transcendentals=transcendentals,
                           bytes_accessed=bytes_accessed)


def init_torch_like_params(key, layer_sizes):
    """Per-layer params matching freshly constructed nn.Linear / nn.BatchNorm1d."""
    n_layers = len(layer_sizes) - 1
    params = []
    for li, (fin, fout) in enumerate(zip(layer_sizes[:-1], layer_sizes[1:])):
        key, kw, kb = jax.random.split(key, 3)
        bound = 1.0 / math.sqrt(fin)
        layer = {
            "w": jax.random.uniform(kw, (fout, fin), jnp.float32, -bound, bound),  # torch [out,in]
            "b": jax.random.uniform(kb, (fout,), jnp.float32, -bound, bound),
        }
        if li < n_layers - 1:
            layer["gamma"] = jnp.ones((fout,), jnp.float32)
            layer["beta"] = jnp.zeros((fout,), jnp.float32)
        params.append(layer)
    return params


def pack_params(layer_sizes, params):
    """Pack every parameter into ONE lane-dense (rows, 128) f32 slab.

    Row layout: [W0(128), W1(128), ..., W_{L-1}(128),
                 gamma0, beta0, gamma1, beta1, ..., final_bias, <zero pad to 8>]
    Weights are stored [in, out] and zero-padded to 128x128 so every matmul is
    lane-dense.  The Linear bias of BN layers is dropped (cancels under
    training-mode BN); the final Linear bias is kept.
    """
    # TODO(synk): layer widths > 128 would need a tiled slab layout + a K/N loop per matmul.
    assert max(layer_sizes) <= LANE
    n_layers = len(layer_sizes) - 1
    blocks = []
    for li, p in enumerate(params):
        fin, fout = layer_sizes[li], layer_sizes[li + 1]
        blocks.append(jnp.pad(p["w"].T, ((0, LANE - fin), (0, LANE - fout))))
    vec_rows = []
    for li in range(n_layers - 1):
        fout = layer_sizes[li + 1]
        vec_rows.append(jnp.pad(params[li]["gamma"], (0, LANE - fout)))
        vec_rows.append(jnp.pad(params[li]["beta"], (0, LANE - fout)))
    vec_rows.append(jnp.pad(params[-1]["b"], (0, LANE - layer_sizes[-1])))
    vec_rows += [jnp.zeros((LANE,), jnp.float32)] * ((-len(vec_rows)) % 8)
    blocks.append(jnp.stack(vec_rows))
    return jnp.concatenate(blocks, axis=0).astype(jnp.float32)


def make_ann_base_forward(layer_sizes, batch):
    """Forward for one batch: x (batch, F_in) -> (batch, 14)."""
    assert layer_sizes[-1] == 14, "Last layer must have 14 outputs"
    assert max(layer_sizes) <= LANE
    out_f = layer_sizes[-1]
    kernel = _make_fused_kernel(layer_sizes, batch)
    vmem = pl.BlockSpec(memory_space=pltpu.MemorySpace.VMEM)

    fused = pl.pallas_call(
        kernel,
        out_shape=jax.ShapeDtypeStruct((batch, LANE), jnp.float32),
        in_specs=[vmem, vmem],
        out_specs=vmem,
        cost_estimate=_cost_estimate(layer_sizes, batch),
    )

    @jax.jit
    def forward(x, slab):
        assert x.shape == (batch, layer_sizes[0]), x.shape   # guards the BN 1/B constant
        xp = jnp.pad(x.astype(jnp.float32), ((0, 0), (0, LANE - layer_sizes[0])))
        return fused(xp, slab)[:, :out_f]

    return forward


def make_ann_base_forward_grouped(layer_sizes, batch_per_group):
    """G independent forward passes (G, B, F_in) -> (G, B, 14) in one pallas_call.

    grid=(G,) with parallel semantics shards groups across TensorCores (v7x) and
    lets BlockSpec double-buffer the x tiles; BN stats stay per-group, identical
    to calling the module G separate times.
    """
    assert layer_sizes[-1] == 14, "Last layer must have 14 outputs"
    assert max(layer_sizes) <= LANE
    out_f = layer_sizes[-1]
    rows = _slab_rows(layer_sizes)
    kernel = _make_fused_kernel(layer_sizes, batch_per_group)

    @jax.jit
    def forward(x, slab):
        G, B, F = x.shape
        assert B == batch_per_group and F == layer_sizes[0], x.shape
        xp = jnp.pad(x.astype(jnp.float32), ((0, 0), (0, 0), (0, LANE - F)))
        out = pl.pallas_call(
            kernel,
            out_shape=jax.ShapeDtypeStruct((G, batch_per_group, LANE), jnp.float32),
            grid=(G,),
            in_specs=[
                pl.BlockSpec((None, batch_per_group, LANE), lambda g: (g, 0, 0)),
                pl.BlockSpec((rows, LANE), lambda g: (0, 0)),   # params resident across grid
            ],
            out_specs=pl.BlockSpec((None, batch_per_group, LANE), lambda g: (g, 0, 0)),
            compiler_params=pltpu.CompilerParams(dimension_semantics=("parallel",)),
            cost_estimate=_cost_estimate(layer_sizes, batch_per_group, groups=G),
        )(xp, slab)
        return out[:, :, :out_f]

    return forward


def ann_base_reference(x, params):
    """Pure-JAX reference matching the PyTorch module in train() mode."""
    n_layers = len(params)
    h = x
    for li, p in enumerate(params):
        y = jnp.dot(h, p["w"].T, precision=jax.lax.Precision.HIGHEST) + p["b"]
        if li < n_layers - 1:
            mean = jnp.mean(y, axis=0, keepdims=True)
            var = jnp.mean(jnp.square(y - mean), axis=0, keepdims=True)  # biased (training)
            y = (y - mean) * jax.lax.rsqrt(var + BN_EPS) * p["gamma"] + p["beta"]
            y = jnp.maximum(y, 0.0)
        h = y
    return h


if __name__ == "__main__":
    # config = {'layers': [32, 64, 32, 14]}
    layer_sizes = [32, 64, 32, 14]
    batch = 8

    key = jax.random.PRNGKey(0)
    key, kx, kp = jax.random.split(key, 3)
    x = jax.random.normal(kx, (batch, layer_sizes[0]), jnp.float32)

    params = init_torch_like_params(kp, layer_sizes)
    slab = pack_params(layer_sizes, params)

    # Single-batch fused kernel.
    forward = make_ann_base_forward(layer_sizes, batch)
    out = jax.block_until_ready(forward(x, slab))
    assert out.shape == (batch, layer_sizes[-1]), out.shape
    assert out.dtype == jnp.float32
    assert bool(jnp.all(jnp.isfinite(out)))
    ref = ann_base_reference(x, params)
    max_err = float(jnp.max(jnp.abs(out - ref)))
    assert max_err < 5e-2, f"kernel deviates from reference: {max_err}"

    # Grouped (grid) variant: G independent batches of 8 in one pallas_call.
    G = 4
    key, kg = jax.random.split(key)
    xg = jax.random.normal(kg, (G, batch, layer_sizes[0]), jnp.float32)
    forward_g = make_ann_base_forward_grouped(layer_sizes, batch)
    out_g = jax.block_until_ready(forward_g(xg, slab))
    assert out_g.shape == (G, batch, layer_sizes[-1]), out_g.shape
    assert bool(jnp.all(jnp.isfinite(out_g)))
    ref_g = jnp.stack([ann_base_reference(xg[g], params) for g in range(G)])
    max_err_g = float(jnp.max(jnp.abs(out_g - ref_g)))
    assert max_err_g < 5e-2, f"grouped kernel deviates from reference: {max_err_g}"

    print("KERNEL_OK")
</pallas_src>

<mosaic_0001>
module attributes {stable_mosaic.version = 11 : i64} {
  func.func @kernel(%arg0: memref<8x128xf32, #tpu.memory_space<vmem>>, %arg1: memref<392x128xf32, #tpu.memory_space<vmem>>, %arg2: memref<8x128xf32, #tpu.memory_space<vmem>>) attributes {dimension_semantics = [], scalar_prefetch = 0 : i64, scratch_operands = 0 : i64, tpu.core_type = #tpu.core_type<tc>} {
    %c0 = arith.constant 0 : index
    %c0_0 = arith.constant 0 : index
    %0 = vector.load %arg0[%c0, %c0_0] : memref<8x128xf32, #tpu.memory_space<vmem>>, vector<8x128xf32>
    %c0_1 = arith.constant 0 : index
    %c0_2 = arith.constant 0 : index
    %1 = vector.load %arg1[%c0_1, %c0_2] : memref<392x128xf32, #tpu.memory_space<vmem>>, vector<128x128xf32>
    %cst = arith.constant dense<0.000000e+00> : vector<8x128xf32>
    %2 = tpu.matmul %0, %1, %cst {dimension_numbers = #tpu.dot_dimension_numbers<[1], [0], [0], [1], [0, 0, 1, 1], [], []>} : vector<8x128xf32>, vector<128x128xf32>, vector<8x128xf32> -> vector<8x128xf32>
    %c384 = arith.constant 384 : index
    %c0_3 = arith.constant 0 : index
    %3 = vector.load %arg1[%c384, %c0_3] : memref<392x128xf32, #tpu.memory_space<vmem>>, vector<1x128xf32>
    %c385 = arith.constant 385 : index
    %c0_4 = arith.constant 0 : index
    %4 = vector.load %arg1[%c385, %c0_4] : memref<392x128xf32, #tpu.memory_space<vmem>>, vector<1x128xf32>
    %cst_5 = arith.constant dense<0.000000e+00> : vector<128xf32>
    %5 = vector.multi_reduction <add>, %2, %cst_5 [0] : vector<8x128xf32> to vector<128xf32>
    %6 = vector.shape_cast %5 : vector<128xf32> to vector<1x128xf32>
    %cst_6 = arith.constant 1.250000e-01 : f32
    %7 = vector.broadcast %cst_6 : f32 to vector<1x128xf32>
    %8 = arith.mulf %6, %7 : vector<1x128xf32>
    %9 = vector.broadcast %8 : vector<1x128xf32> to vector<8x128xf32>
    %10 = arith.subf %2, %9 : vector<8x128xf32>
    %11 = arith.mulf %10, %10 : vector<8x128xf32>
    %cst_7 = arith.constant dense<0.000000e+00> : vector<128xf32>
    %12 = vector.multi_reduction <add>, %11, %cst_7 [0] : vector<8x128xf32> to vector<128xf32>
    %13 = vector.shape_cast %12 : vector<128xf32> to vector<1x128xf32>
    %cst_8 = arith.constant 1.250000e-01 : f32
    %14 = vector.broadcast %cst_8 : f32 to vector<1x128xf32>
    %15 = arith.mulf %13, %14 : vector<1x128xf32>
    %cst_9 = arith.constant 9.99999974E-6 : f32
    %16 = vector.broadcast %cst_9 : f32 to vector<1x128xf32>
    %17 = arith.addf %15, %16 : vector<1x128xf32>
    %18 = math.rsqrt %17 : vector<1x128xf32>
    %19 = arith.mulf %3, %18 : vector<1x128xf32>
    %20 = vector.broadcast %19 : vector<1x128xf32> to vector<8x128xf32>
    %21 = arith.mulf %10, %20 : vector<8x128xf32>
    %22 = vector.broadcast %4 : vector<1x128xf32> to vector<8x128xf32>
    %23 = arith.addf %21, %22 : vector<8x128xf32>
    %cst_10 = arith.constant 0.000000e+00 : f32
    %24 = vector.broadcast %cst_10 : f32 to vector<8x128xf32>
    %25 = arith.maximumf %23, %24 : vector<8x128xf32>
    %c128 = arith.constant 128 : index
    %c0_11 = arith.constant 0 : index
    %26 = vector.load %arg1[%c128, %c0_11] : memref<392x128xf32, #tpu.memory_space<vmem>>, vector<128x128xf32>
    %cst_12 = arith.constant dense<0.000000e+00> : vector<8x128xf32>
    %27 = tpu.matmul %25, %26, %cst_12 {dimension_numbers = #tpu.dot_dimension_numbers<[1], [0], [0], [1], [0, 0, 1, 1], [], []>} : vector<8x128xf32>, vector<128x128xf32>, vector<8x128xf32> -> vector<8x128xf32>
    %c386 = arith.constant 386 : index
    %c0_13 = arith.constant 0 : index
    %28 = vector.load %arg1[%c386, %c0_13] : memref<392x128xf32, #tpu.memory_space<vmem>>, vector<1x128xf32>
    %c387 = arith.constant 387 : index
    %c0_14 = arith.constant 0 : index
    %29 = vector.load %arg1[%c387, %c0_14] : memref<392x128xf32, #tpu.memory_space<vmem>>, vector<1x128xf32>
    %cst_15 = arith.constant dense<0.000000e+00> : vector<128xf32>
    %30 = vector.multi_reduction <add>, %27, %cst_15 [0] : vector<8x128xf32> to vector<128xf32>
    %31 = vector.shape_cast %30 : vector<128xf32> to vector<1x128xf32>
    %cst_16 = arith.constant 1.250000e-01 : f32
    %32 = vector.broadcast %cst_16 : f32 to vector<1x128xf32>
    %33 = arith.mulf %31, %32 : vector<1x128xf32>
    %34 = vector.broadcast %33 : vector<1x128xf32> to vector<8x128xf32>
    %35 = arith.subf %27, %34 : vector<8x128xf32>
    %36 = arith.mulf %35, %35 : vector<8x128xf32>
    %cst_17 = arith.constant dense<0.000000e+00> : vector<128xf32>
    %37 = vector.multi_reduction <add>, %36, %cst_17 [0] : vector<8x128xf32> to vector<128xf32>
    %38 = vector.shape_cast %37 : vector<128xf32> to vector<1x128xf32>
    %cst_18 = arith.constant 1.250000e-01 : f32
    %39 = vector.broadcast %cst_18 : f32 to vector<1x128xf32>
    %40 = arith.mulf %38, %39 : vector<1x128xf32>
    %cst_19 = arith.constant 9.99999974E-6 : f32
    %41 = vector.broadcast %cst_19 : f32 to vector<1x128xf32>
    %42 = arith.addf %40, %41 : vector<1x128xf32>
    %43 = math.rsqrt %42 : vector<1x128xf32>
    %44 = arith.mulf %28, %43 : vector<1x128xf32>
    %45 = vector.broadcast %44 : vector<1x128xf32> to vector<8x128xf32>
    %46 = arith.mulf %35, %45 : vector<8x128xf32>
    %47 = vector.broadcast %29 : vector<1x128xf32> to vector<8x128xf32>
    %48 = arith.addf %46, %47 : vector<8x128xf32>
    %cst_20 = arith.constant 0.000000e+00 : f32
    %49 = vector.broadcast %cst_20 : f32 to vector<8x128xf32>
    %50 = arith.maximumf %48, %49 : vector<8x128xf32>
    %c256 = arith.constant 256 : index
    %c0_21 = arith.constant 0 : index
    %51 = vector.load %arg1[%c256, %c0_21] : memref<392x128xf32, #tpu.memory_space<vmem>>, vector<128x128xf32>
    %cst_22 = arith.constant dense<0.000000e+00> : vector<8x128xf32>
    %52 = tpu.matmul %50, %51, %cst_22 {dimension_numbers = #tpu.dot_dimension_numbers<[1], [0], [0], [1], [0, 0, 1, 1], [], []>} : vector<8x128xf32>, vector<128x128xf32>, vector<8x128xf32> -> vector<8x128xf32>
    %c388 = arith.constant 388 : index
    %c0_23 = arith.constant 0 : index
    %53 = vector.load %arg1[%c388, %c0_23] : memref<392x128xf32, #tpu.memory_space<vmem>>, vector<1x128xf32>
    %54 = vector.broadcast %53 : vector<1x128xf32> to vector<8x128xf32>
    %55 = arith.addf %52, %54 : vector<8x128xf32>
    %c0_24 = arith.constant 0 : index
    %c0_25 = arith.constant 0 : index
    %56 = vector.load %arg2[%c0_24, %c0_25] : memref<8x128xf32, #tpu.memory_space<vmem>>, vector<8x128xf32>
    tpu.vector_store %arg2[%c0_24, %c0_25], %55 {strides = array<i32>} : memref<8x128xf32, #tpu.memory_space<vmem>>, vector<8x128xf32>,
    return
  }
}

</mosaic_0001>

<bundles_post_ra>
// kernel: forward.1
= control target key start
LH: loop header
LB: loop body
LE: loop exit
PB: predicated region body
PF: predicated region fallthrough
CT: control target
= control target key end

     0   :  { %7 = vsyncpa [#allocation3], 0  ;;  %s318_s0 = inlined_call_operand.vmem [shape: f32[8,128], index: 0, kind: input, shape index: {}]   ;;  %s319_s1 = inlined_call_operand.hbm [shape: f32[392,128], index: 1, kind: input, shape index: {}]   ;;  %s320_s2 = inlined_call_operand.hbm [shape: f32[8,128], index: 2, kind: output, shape index: {}]  }
   0x1   :  { %8 = vsyncpa [#allocation4], 0  ;;  %s15_s11 = sshll.u32 %s319_s1, 4  ;;  %s290_s12 = smov [#allocation2]   ;;  %s16_s11 = int_to_ptr.hbm [resolvable:$true] %s15_s11 }
   0x2   :  { %s17_s13 = sshll.u32 %s290_s12, 4  ;;  %s291_s14 = smov 128   ;;  %s18_s13 = int_to_ptr.vmem [resolvable:$true] %s17_s13 }
   0x3   :  { %s292_s15 = smov 8  }
   0x4   :  { %23 = dma.hbm_to_vmem [thread:$0]  %s16_s11, 6272, %s18_s13, [#allocation3], %s291_s14, %s291_s14, %s292_s15  }
   0x5   :  { %286 = dma.done.wait [#allocation3], 6272  }
   0x6   :  { %287 = vsyncadd [#allocation3], 4294961024  ;;  %v44_v0 = vld [vmem:[#allocation2 + $0x78] sm:$0xff]  ;;  %v43_v1 = vld [vmem:[#allocation2 + $0x70] sm:$0xff]  ;;  %s217_s20 = sshll.u32 %s320_s2, 4  ;;  %s218_s20 = int_to_ptr.hbm [resolvable:$true] %s217_s20 }
   0x7   :  { %45 = vmatpush.msra.mxu0 %v44_v0  ;;  %v42_v2 = vld [vmem:[#allocation2 + $0x68] sm:$0xff]  ;;  %v41_v3 = vld [vmem:[#allocation2 + $0x60] sm:$0xff]  ;;  %v40_v4 = vld [vmem:[#allocation2 + $0x58] sm:$0xff] }
   0x8   :  { %v39_v5 = vld [vmem:[#allocation2 + $0x50] sm:$0xff]  ;;  %v38_v6 = vld [vmem:[#allocation2 + $0x48] sm:$0xff]  ;;  %v37_v7 = vld [vmem:[#allocation2 + $0x40] sm:$0xff] }
   0x9   :  { %46 = vmatpush.msra.mxu0 %v43_v1  ;;  %v36_v8 = vld [vmem:[#allocation2 + $0x38] sm:$0xff]  ;;  %v35_v9 = vld [vmem:[#allocation2 + $0x30] sm:$0xff]  ;;  %v34_v10 = vld [vmem:[#allocation2 + $0x28] sm:$0xff] }
   0xa   :  { %v33_v11 = vld [vmem:[#allocation2 + $0x20] sm:$0xff]  ;;  %v32_v12 = vld [vmem:[#allocation2 + $0x18] sm:$0xff]  ;;  %v31_v13 = vld [vmem:[#allocation2 + $0x10] sm:$0xff] }
   0xb   :  { %47 = vmatpush.msra.mxu0 %v42_v2  ;;  %v30_v14 = vld [vmem:[#allocation2 + $0x8] sm:$0xff]  ;;  %v29_v15 = vld [vmem:[#allocation2] sm:$0xff]  ;;  %v115_v17 = vld [vmem:[#allocation2 + $0xf8] sm:$0xff] }
   0xc   :  { %v28_v16 = vld [vmem:[%s318_s0] sm:$0xff]  ;;  %116 = vmatpush.msra.mxu1 %v115_v17  ;;  %v114_v20 = vld [vmem:[#allocation2 + $0xf0] sm:$0xff]  ;;  %v113_v22 = vld [vmem:[#allocation2 + $0xe8] sm:$0xff]  ;;  %s293_s0 = smov [#allocation5]  }
   0xd   :  { %48 = vmatpush.msra.mxu0 %v41_v3  ;;  %v112_v24 = vld [vmem:[#allocation2 + $0xe0] sm:$0xff]  ;;  %v111_v26 = vld [vmem:[#allocation2 + $0xd8] sm:$0xff]  ;;  %v110_v28 = vld [vmem:[#allocation2 + $0xd0] sm:$0xff]  ;;  %s215_s17 = sshll.u32 %s293_s0, 4  ;;  %s216_s17 = int_to_ptr.vmem [resolvable:$true] %s215_s17 }
   0xe   :  { %117 = vmatpush.msra.mxu1 %v114_v20  ;;  %v109_v30 = vld [vmem:[#allocation2 + $0xc8] sm:$0xff]  ;;  %v108_v32 = vld [vmem:[#allocation2 + $0xc0] sm:$0xff]  ;;  %v107_v34 = vld [vmem:[#allocation2 + $0xb8] sm:$0xff] }
   0xf   :  { %49 = vmatpush.msra.mxu0 %v40_v4  ;;  %v106_v36 = vld [vmem:[#allocation2 + $0xb0] sm:$0xff]  ;;  %v105_v38 = vld [vmem:[#allocation2 + $0xa8] sm:$0xff]  ;;  %v104_v40 = vld [vmem:[#allocation2 + $0xa0] sm:$0xff] }
  0x10   :  { %118 = vmatpush.msra.mxu1 %v113_v22  ;;  %v103_v42 = vld [vmem:[#allocation2 + $0x98] sm:$0xff]  ;;  %v102_v44 = vld [vmem:[#allocation2 + $0x90] sm:$0xff]  ;;  %v101_v45 = vld [vmem:[#allocation2 + $0x88] sm:$0xff] }
  0x11   :  { %50 = vmatpush.msra.mxu0 %v39_v5  ;;  %v100_v47 = vld [vmem:[#allocation2 + $0x80] sm:$0xff]  ;;  %v186_v1 = vld [vmem:[#allocation2 + $0x178] sm:$0xff]  ;;  %v185_v4 = vld [vmem:[#allocation2 + $0x170] sm:$0xff] }
  0x12   :  { %119 = vmatpush.msra.mxu1 %v112_v24  ;;  %v65_v56 = vld [vmem:[#allocation2 + $0x180] sm:$0x1]  ;;  %v231_v61 = vld [vmem:[#allocation2 + $0x181] ss:$0 sm:$0xff]  ;;  %189 = vmatpush.msra.mxu2 %v186_v1  ;;  %v177_v20 = vld [vmem:[#allocation2 + $0x130] sm:$0xff] }
  0x13   :  { %51 = vmatpush.msra.mxu0 %v38_v6  ;;  %v184_v6 = vld [vmem:[#allocation2 + $0x168] sm:$0xff]  ;;  %v175_v24 = vld [vmem:[#allocation2 + $0x120] sm:$0xff] }
  0x14   :  { %120 = vmatpush.msra.mxu1 %v111_v26  ;;  %190 = vmatpush.msra.mxu2 %v185_v4  ;;  %v176_v22 = vld [vmem:[#allocation2 + $0x128] sm:$0xff]  ;;  %v174_v26 = vld [vmem:[#allocation2 + $0x118] sm:$0xff] }
  0x15   :  { %52 = vmatpush.msra.mxu0 %v37_v7 }
  0x16   :  { %121 = vmatpush.msra.mxu1 %v110_v28  ;;  %191 = vmatpush.msra.mxu2 %v184_v6  ;;  %v173_v28 = vld [vmem:[#allocation2 + $0x110] sm:$0xff] }
  0x17   :  { %53 = vmatpush.msra.mxu0 %v36_v8  ;;  %v183_v8 = vld [vmem:[#allocation2 + $0x160] sm:$0xff] }
  0x18   :  { %122 = vmatpush.msra.mxu1 %v109_v30  ;;  %192 = vmatpush.msra.mxu2 %v183_v8 }
  0x19   :  { %54 = vmatpush.msra.mxu0 %v35_v9 }
  0x1a   :  { %123 = vmatpush.msra.mxu1 %v108_v32 }
  0x1b   :  { %55 = vmatpush.msra.mxu0 %v34_v10  ;;  %v182_v10 = vld [vmem:[#allocation2 + $0x158] sm:$0xff] }
  0x1c   :  { %124 = vmatpush.msra.mxu1 %v107_v34  ;;  %193 = vmatpush.msra.mxu2 %v182_v10 }
  0x1d   :  { %56 = vmatpush.msra.mxu0 %v33_v11 }
  0x1e   :  { %125 = vmatpush.msra.mxu1 %v106_v36 }
  0x1f   :  { %57 = vmatpush.msra.mxu0 %v32_v12  ;;  %v181_v12 = vld [vmem:[#allocation2 + $0x150] sm:$0xff] }
  0x20   :  { %126 = vmatpush.msra.mxu1 %v105_v38  ;;  %194 = vmatpush.msra.mxu2 %v181_v12 }
  0x21   :  { %58 = vmatpush.msra.mxu0 %v31_v13 }
  0x22   :  { %127 = vmatpush.msra.mxu1 %v104_v40  ;;  %v136_v40 = vld [vmem:[#allocation2 + $0x182] sm:$0x1] }
  0x23   :  { %59 = vmatpush.msra.mxu0 %v30_v14  ;;  %v180_v14 = vld [vmem:[#allocation2 + $0x148] sm:$0xff] }
  0x24   :  { %128 = vmatpush.msra.mxu1 %v103_v42  ;;  %195 = vmatpush.msra.mxu2 %v180_v14 }
  0x25   :  { %60 = vmatpush.msra.mxu0 %v29_v15 }
  0x26   :  { %61 = vmatmul.f32.vlgmr.msra.gmra.mxu0 %v28_v16  ;;  %129 = vmatpush.msra.mxu1 %v102_v44  ;;  %v179_v16 = vld [vmem:[#allocation2 + $0x140] sm:$0xff] }
  0x27   :  { %196 = vmatpush.msra.mxu2 %v179_v16 }
  0x28   :  { %130 = vmatpush.msra.mxu1 %v101_v45  ;;  %v232_v45 = vld [vmem:[#allocation2 + $0x183] ss:$0 sm:$0xff] }
  0x2a   :  { %131 = vmatpush.msra.mxu1 %v100_v47 }
  0xa3   :  { %v62_v18 = vpop.f32.mrf.mxu0 }
  0xa4   :  { %v67_v19 = vrot.slane %v62_v18, 4 }
  0xa6   :  { %v68_v21 = vadd.f32 %v67_v19, %v62_v18 }
  0xa8   :  { %v69_v23 = vrot.slane %v68_v21, 2 }
  0xaa   :  { %v70_v25 = vadd.f32 %v69_v23, %v68_v21 }
  0xac   :  { %v71_v27 = vrot.slane %v70_v25, 1 }
  0xae   :  { %v72_v29 = vadd.f32 %v71_v27, %v70_v25 }
  0xb0   :  { %v73_v31 = vmul.f32 0.125, %v72_v29  ;;  %v172_v29 = vld [vmem:[#allocation2 + $0x108] sm:$0xff] }
  0xb2   :  { %v74_v33 = vsub.f32 %v62_v18, %v73_v31  ;;  %v178_v18 = vld [vmem:[#allocation2 + $0x138] sm:$0xff]  ;;  %v171_v31 = vld [vmem:[#allocation2 + $0x100] sm:$0xff] }
  0xb3   :  { %197 = vmatpush.msra.mxu2 %v178_v18 }
  0xb4   :  { %v75_v35 = vmul.f32 %v74_v33, %v74_v33 }
  0xb5   :  { %198 = vmatpush.msra.mxu2 %v177_v20 }
  0xb6   :  { %v76_v37 = vrot.slane %v75_v35, 4 }
  0xb7   :  { %199 = vmatpush.msra.mxu2 %v176_v22 }
  0xb8   :  { %v77_v39 = vadd.f32 %v76_v37, %v75_v35 }
  0xb9   :  { %200 = vmatpush.msra.mxu2 %v175_v24 }
  0xba   :  { %v78_v41 = vrot.slane %v77_v39, 2 }
  0xbb   :  { %201 = vmatpush.msra.mxu2 %v174_v26 }
  0xbc   :  { %v79_v43 = vadd.f32 %v78_v41, %v77_v39 }
  0xbd   :  { %202 = vmatpush.msra.mxu2 %v173_v28 }
  0xbe   :  { %v80_v46 = vrot.slane %v79_v43, 1 }
  0xbf   :  { %203 = vmatpush.msra.mxu2 %v172_v29 }
  0xc0   :  { %v81_v48 = vadd.f32 %v80_v46, %v79_v43 }
  0xc1   :  { %204 = vmatpush.msra.mxu2 %v171_v31 }
  0xc2   :  { %v82_v49 = vmul.f32 0.125, %v81_v48 }
  0xc4   :  { %v83_v50 = vadd.f32 1e-05, %v82_v49  ;;  %v233_v49 = vld [vmem:[#allocation2 + $0x184] ss:$0 sm:$0xff] }
  0xc6   :  { %234 = vrsqrt.f32 %v83_v50  ;;  %vm90_vm1 = vweird.f32 %v83_v50 }
  0xcc   :  { %v235_v51 = vpop.eup %234 }
  0xcd   :  { %v85_v52 = vmul.f32 %v235_v51, %v83_v50  ;;  %vm91_vm0 = vweird.f32 %v235_v51 }
  0xce   :  { %vm92_vm2 = vmor %vm90_vm1, %vm91_vm0 }
  0xcf   :  { %v86_v53 = vmul.f32 %v235_v51, %v85_v52 }
  0xd1   :  { %v87_v54 = vmul.f32 0.5, %v86_v53 }
  0xd3   :  { %v88_v55 = vsub.f32 1.5, %v87_v54 }
  0xd5   :  { %v89_v57 = vmul.f32 %v235_v51, %v88_v55 }
  0xd7   :  { %v93_v58 = vsel %vm92_vm2, %v235_v51, %v89_v57 }
  0xd8   :  { %v94_v59 = vmul.f32 %v93_v58, %v65_v56 }
  0xda   :  { %v95_v60 = vperm.slane %v94_v59, 0 }
  0xdc   :  { %v96_v62 = vmul.f32 %v95_v60, %v74_v33 }
  0xde   :  { %v98_v63 = vadd.f32 %v231_v61, %v96_v62 }
  0xe0   :  { %v99_v0 = vmax.f32 %v98_v63, 0.0 }
  0xe2   :  { %132 = vmatmul.f32.vlgmr.msra.gmra.mxu1 %v99_v0 }
 0x15f   :  { %v133_v2 = vpop.f32.mrf.mxu1 }
 0x160   :  { %v138_v3 = vrot.slane %v133_v2, 4 }
 0x162   :  { %v139_v5 = vadd.f32 %v138_v3, %v133_v2 }
 0x164   :  { %v140_v7 = vrot.slane %v139_v5, 2 }
 0x166   :  { %v141_v9 = vadd.f32 %v140_v7, %v139_v5 }
 0x168   :  { %v142_v11 = vrot.slane %v141_v9, 1 }
 0x16a   :  { %v143_v13 = vadd.f32 %v142_v11, %v141_v9 }
 0x16c   :  { %v144_v15 = vmul.f32 0.125, %v143_v13 }
 0x16e   :  { %v145_v17 = vsub.f32 %v133_v2, %v144_v15 }
 0x170   :  { %v146_v19 = vmul.f32 %v145_v17, %v145_v17 }
 0x172   :  { %v147_v21 = vrot.slane %v146_v19, 4 }
 0x174   :  { %v148_v23 = vadd.f32 %v147_v21, %v146_v19 }
 0x176   :  { %v149_v25 = vrot.slane %v148_v23, 2 }
 0x178   :  { %v150_v27 = vadd.f32 %v149_v25, %v148_v23 }
 0x17a   :  { %v151_v30 = vrot.slane %v150_v27, 1 }
 0x17c   :  { %v152_v32 = vadd.f32 %v151_v30, %v150_v27 }
 0x17e   :  { %v153_v33 = vmul.f32 0.125, %v152_v32 }
 0x180   :  { %v154_v34 = vadd.f32 1e-05, %v153_v33 }
 0x182   :  { %236 = vrsqrt.f32 %v154_v34  ;;  %vm161_vm4 = vweird.f32 %v154_v34 }
 0x188   :  { %v237_v35 = vpop.eup %236 }
 0x189   :  { %v156_v36 = vmul.f32 %v237_v35, %v154_v34  ;;  %vm162_vm3 = vweird.f32 %v237_v35 }
 0x18a   :  { %vm163_vm5 = vmor %vm161_vm4, %vm162_vm3 }
 0x18b   :  { %v157_v37 = vmul.f32 %v237_v35, %v156_v36 }
 0x18d   :  { %v158_v38 = vmul.f32 0.5, %v157_v37 }
 0x18f   :  { %v159_v39 = vsub.f32 1.5, %v158_v38 }
 0x191   :  { %v160_v41 = vmul.f32 %v237_v35, %v159_v39 }
 0x193   :  { %v164_v42 = vsel %vm163_vm5, %v237_v35, %v160_v41 }
 0x194   :  { %v165_v43 = vmul.f32 %v164_v42, %v136_v40 }
 0x196   :  { %v166_v44 = vperm.slane %v165_v43, 0 }
 0x198   :  { %v167_v46 = vmul.f32 %v166_v44, %v145_v17 }
 0x19a   :  { %v169_v47 = vadd.f32 %v232_v45, %v167_v46 }
 0x19c   :  { %v170_v48 = vmax.f32 %v169_v47, 0.0 }
 0x19e   :  { %205 = vmatmul.f32.vlgmr.msra.gmra.mxu2 %v170_v48 }
 0x221   :  { %v206_v50 = vpop.f32.mrf.mxu2 }
 0x222   :  { %v207_v51 = vadd.f32 %v233_v49, %v206_v50 }
 0x224   :  { %209 = vst [vmem:[#allocation5] sm:$0xff] %v207_v51 }
 0x225   :  { %220 = dma.vmem_to_hbm [thread:$0]  %s216_s17, 128, %s218_s20, [#allocation4]  }
 0x226   :  { %288 = dma.done.wait [#allocation4], 128  }
 0x227   :  { %289 = vsyncadd [#allocation4], 4294967168 }
 0x228   :  { %225 = vsyncpa [#allocation3], 1 }
 0x229   :  { %226 = vsyncpa [#allocation4], 1 }

</bundles_post_ra>
